<compile_context>
chip_gen: v7x
topology: tpu7x:2x2x1
jax: 0.10.0
libtpu: 0.0.40
codegen_flags: <defaults>
</compile_context>

<pallas_src>
import functools
import math

import jax
import jax.numpy as jnp
from jax.experimental import pallas as pl
from jax.experimental.pallas import tpu as pltpu


def _round_up(x, m):
    return ((x + m - 1) // m) * m


def _cdiv(a, b):
    return -(-a // b)


def _device_kind():
    try:
        return jax.devices()[0].device_kind.lower()
    except Exception:
        return ""


def _vmem_capacity_bytes():
    try:
        return int(pltpu.get_tpu_info().vmem_capacity_bytes)
    except Exception:
        pass
    kind = _device_kind()
    if "v7" in kind:
        return 64 << 20
    if "v5" in kind or "v6" in kind:
        return 128 << 20
    return 64 << 20  # unknown: be conservative


def _gelu_sigmoid(x):
    # Sigmoid-form GELU: exp goes to the EUP, so the VALU cost is ~2-3 ops/elem.
    # NOTE: diverges from PyTorch's exact-erf GELU by <~2e-2 per activation
    # (accepted accuracy tradeoff, see tolerance in __main__).
    return x * jax.nn.sigmoid(1.702 * x)


def _gelu_exact(x):
    # Exact erf GELU (PyTorch nn.GELU() default) -- reference only.
    return 0.5 * x * (1.0 + jax.lax.erf(x * (1.0 / math.sqrt(2.0))))


def onehotnet_kernel(x_ref,
                     w1_ref, b1_ref, w2_ref, b2_ref, w3_ref, b3_ref,
                     w4_ref, b4_ref, w5_ref, b5_ref,
                     o_ref, *, act_dtype):
    layers = ((w1_ref, b1_ref), (w2_ref, b2_ref), (w3_ref, b3_ref),
              (w4_ref, b4_ref), (w5_ref, b5_ref))

    def chain(h):
        # 5x bf16 MXU matmul with f32 accumulation; GELU between layers.
        for idx, (w_ref, b_ref) in enumerate(layers):
            acc = jnp.dot(h, w_ref[...], preferred_element_type=jnp.float32)
            acc = acc + b_ref[...]
            if idx < len(layers) - 1:
                h = _gelu_sigmoid(acc.astype(act_dtype)).astype(jnp.bfloat16)
            else:
                h = acc
        return h

    # Two independent half-tiles in the same straight-line trace: the LLO
    # scheduler can co-issue one half's vmatmul with the other half's GELU.
    half = x_ref.shape[0] // 2
    o_ref[:half, :] = chain(x_ref[:half, :]).astype(o_ref.dtype)
    o_ref[half:, :] = chain(x_ref[half:, :]).astype(o_ref.dtype)


def _vmem_bytes_estimate(tile_b, fp, hp, cp):
    # weights: bf16, single-buffered (constant index_map + pl.Buffered(1))
    w = 2 * (fp * hp + 3 * hp * hp + hp * cp)
    # biases: f32, single-buffered
    b = 4 * (4 * hp + cp)
    # x (bf16) and out (bf16) tiles, double-buffered by the pipeline
    io = 2 * 2 * (tile_b * fp) + 2 * 2 * (tile_b * cp)
    # rough budget for live f32 intermediates of the two half-tile chains
    act = 4 * tile_b * hp * 4
    return w + b + io + act


def pack_params(params, fp, hp, cp):
    """Zero-pad weights/biases to lane-dense shapes; weights -> bf16, biases f32."""
    dims_p = [(fp, hp), (hp, hp), (hp, hp), (hp, hp), (hp, cp)]
    flat = []
    for (w, b), (dip, dop) in zip(params, dims_p):
        din, dout = w.shape
        wp = jnp.zeros((dip, dop), jnp.float32).at[:din, :dout].set(w)
        bp = jnp.zeros((1, dop), jnp.float32).at[:, :dout].set(b.reshape(1, dout))
        flat += [wp.astype(jnp.bfloat16), bp]
    return flat


def onehotnet_forward(x, params, *, tile_b=None):
    """x: [B, F]. params: list of 5 (W [in,out] f32, b [1,out] f32)."""
    B, F = x.shape
    H = params[0][0].shape[1]          # 2 * F
    C = params[-1][0].shape[1]         # num_classes

    fp = _round_up(F, 128)
    hp = _round_up(H, 128)
    cp = _round_up(C, 128)

    capacity = _vmem_capacity_bytes()
    budget = capacity // 2             # tile-sizing budget (pipeline headroom)

    TILE_MIN = 32                      # multiple of 32 -> bf16-packed half tiles
    if _vmem_bytes_estimate(TILE_MIN, fp, hp, cp) > (capacity * 3) // 4:
        # TODO(synk): add a K-tiled "arbitrary" grid axis over the hidden dim
        # once the resident weights no longer fit in VMEM.
        raise ValueError("OneHotNet weights too large for a VMEM-resident kernel")

    # ---- batch tile: multiple of 32, fit the per-generation VMEM budget.
    if tile_b is None:
        tile_b = min(1024, _round_up(B, TILE_MIN))
        while tile_b > TILE_MIN and _vmem_bytes_estimate(tile_b, fp, hp, cp) > budget:
            tile_b = max(TILE_MIN, _round_up(tile_b // 2, TILE_MIN))
        # Keep both v7x TensorCores busy: >= 2 grid steps when the batch allows.
        if B >= 2 * TILE_MIN:
            tile_b = min(tile_b, _round_up(_cdiv(B, 2), TILE_MIN))
    tile_b = max(TILE_MIN, _round_up(tile_b, TILE_MIN))
    Bp = _round_up(B, tile_b)
    grid = (Bp // tile_b,)

    # ---- inputs: single cast, pad only when actually needed.
    # (Padded batch rows are NOT zero after layer 1 — they become GELU(b) — but
    #  they are sliced off below, so nothing downstream relies on them.)
    x_b = x.astype(jnp.bfloat16)
    if Bp != B or fp != F:
        x_b = jnp.pad(x_b, ((0, Bp - B), (0, fp - F)))
    flat_params = pack_params(params, fp, hp, cp)

    # ---- specs: weights/biases are full blocks, resident & single-buffered.
    def resident_spec(shape):
        try:
            return pl.BlockSpec(shape, lambda i: (0, 0), pipeline_mode=pl.Buffered(1))
        except TypeError:  # older jax without pipeline_mode kwarg
            return pl.BlockSpec(shape, lambda i: (0, 0))

    in_specs = [pl.BlockSpec((tile_b, fp), lambda i: (i, 0))]
    in_specs += [resident_spec(p.shape) for p in flat_params]
    out_spec = pl.BlockSpec((tile_b, cp), lambda i: (i, 0))

    est = _vmem_bytes_estimate(tile_b, fp, hp, cp)
    vmem_limit = int(min((capacity * 3) // 4, max(32 << 20, 2 * est)))

    # bf16 activation math only where the VPU/EUP support it (v6e, v7x).
    kind = _device_kind()
    act_dtype = jnp.bfloat16 if ("v6" in kind or "v7" in kind) else jnp.float32

    out_p = pl.pallas_call(
        functools.partial(onehotnet_kernel, act_dtype=act_dtype),
        out_shape=jax.ShapeDtypeStruct((Bp, cp), jnp.bfloat16),
        grid_spec=pltpu.PrefetchScalarGridSpec(
            num_scalar_prefetch=0,
            grid=grid,
            in_specs=in_specs,
            out_specs=out_spec,
        ),
        compiler_params=pltpu.CompilerParams(
            dimension_semantics=("parallel",),
            vmem_limit_bytes=vmem_limit,
        ),
    )(x_b, *flat_params)

    return out_p[:B, :C].astype(x.dtype)


def init_onehotnet_params(key, num_features, num_classes=2):
    """Deterministic PyTorch-style (kaiming-uniform-ish) init. Weights stored [in, out]."""
    dims = [(num_features, 2 * num_features),
            (2 * num_features, 2 * num_features),
            (2 * num_features, 2 * num_features),
            (2 * num_features, 2 * num_features),
            (2 * num_features, num_classes)]
    params = []
    for (din, dout) in dims:
        key, kw, kb = jax.random.split(key, 3)
        bound = 1.0 / math.sqrt(din)
        w = jax.random.uniform(kw, (din, dout), jnp.float32, -bound, bound)
        b = jax.random.uniform(kb, (1, dout), jnp.float32, -bound, bound)
        params.append((w, b))
    return params


def onehotnet_reference(x, params):
    # f32, exact-erf GELU: matches PyTorch OneHotNet.forward semantics.
    h = x.astype(jnp.float32)
    for i, (w, b) in enumerate(params):
        h = h @ w + b
        if i < len(params) - 1:
            h = _gelu_exact(h)
    return h.astype(x.dtype)


if __name__ == "__main__":
    B, F, C = 8, 32, 2

    key = jax.random.PRNGKey(0)
    k_x, k_p = jax.random.split(key)
    x = jax.random.normal(k_x, (B, F), dtype=jnp.float32)
    params = init_onehotnet_params(k_p, F, C)

    out = onehotnet_forward(x, params)
    out = jax.block_until_ready(out)

    ref = onehotnet_reference(x, params)
    assert out.shape == (B, C)
    # Tolerance vs. the f32 / exact-erf reference is loosened because the kernel
    # uses bf16 matmuls, bf16 output, and the sigmoid-GELU approximation
    # (accepted perf tradeoffs; error stays well inside this bound).
    assert jnp.allclose(out, ref, atol=7.5e-2, rtol=7.5e-2), "mismatch vs reference"

    print("KERNEL_OK")
</pallas_src>

<mosaic_0001>
module attributes {stable_mosaic.version = 11 : i64} {
  func.func @onehotnet_kernel(%arg0: i32, %arg1: memref<32x128xbf16, #tpu.memory_space<vmem>>, %arg2: memref<128x128xbf16, #tpu.memory_space<vmem>>, %arg3: memref<1x128xf32, #tpu.memory_space<vmem>>, %arg4: memref<128x128xbf16, #tpu.memory_space<vmem>>, %arg5: memref<1x128xf32, #tpu.memory_space<vmem>>, %arg6: memref<128x128xbf16, #tpu.memory_space<vmem>>, %arg7: memref<1x128xf32, #tpu.memory_space<vmem>>, %arg8: memref<128x128xbf16, #tpu.memory_space<vmem>>, %arg9: memref<1x128xf32, #tpu.memory_space<vmem>>, %arg10: memref<128x128xbf16, #tpu.memory_space<vmem>>, %arg11: memref<1x128xf32, #tpu.memory_space<vmem>>, %arg12: memref<32x128xbf16, #tpu.memory_space<vmem>>) attributes {dimension_semantics = [#tpu.dimension_semantics<parallel>], iteration_bounds = array<i64: 1>, scalar_prefetch = 0 : i64, scratch_operands = 0 : i64, tpu.core_type = #tpu.core_type<tc>, window_params = [{transform_indices = @transform_0, window_bounds = array<i64: 32, 128>}, {pipeline_mode = #tpu.pipeline_mode<synchronous>, transform_indices = @transform_1, window_bounds = array<i64: 128, 128>}, {pipeline_mode = #tpu.pipeline_mode<synchronous>, transform_indices = @transform_2, window_bounds = array<i64: 1, 128>}, {pipeline_mode = #tpu.pipeline_mode<synchronous>, transform_indices = @transform_3, window_bounds = array<i64: 128, 128>}, {pipeline_mode = #tpu.pipeline_mode<synchronous>, transform_indices = @transform_4, window_bounds = array<i64: 1, 128>}, {pipeline_mode = #tpu.pipeline_mode<synchronous>, transform_indices = @transform_5, window_bounds = array<i64: 128, 128>}, {pipeline_mode = #tpu.pipeline_mode<synchronous>, transform_indices = @transform_6, window_bounds = array<i64: 1, 128>}, {pipeline_mode = #tpu.pipeline_mode<synchronous>, transform_indices = @transform_7, window_bounds = array<i64: 128, 128>}, {pipeline_mode = #tpu.pipeline_mode<synchronous>, transform_indices = @transform_8, window_bounds = array<i64: 1, 128>}, {pipeline_mode = #tpu.pipeline_mode<synchronous>, transform_indices = @transform_9, window_bounds = array<i64: 128, 128>}, {pipeline_mode = #tpu.pipeline_mode<synchronous>, transform_indices = @transform_10, window_bounds = array<i64: 1, 128>}, {transform_indices = @transform_11, window_bounds = array<i64: 32, 128>}]} {
    %c0 = arith.constant 0 : index
    %c0_0 = arith.constant 0 : index
    %0 = vector.load %arg1[%c0, %c0_0] : memref<32x128xbf16, #tpu.memory_space<vmem>>, vector<16x128xbf16>
    %c0_1 = arith.constant 0 : index
    %c0_2 = arith.constant 0 : index
    %1 = vector.load %arg2[%c0_1, %c0_2] : memref<128x128xbf16, #tpu.memory_space<vmem>>, vector<128x128xbf16>
    %cst = arith.constant dense<0.000000e+00> : vector<16x128xf32>
    %2 = tpu.matmul %0, %1, %cst {dimension_numbers = #tpu.dot_dimension_numbers<[1], [0], [0], [1], [0, 0, 1, 1], [], []>} : vector<16x128xbf16>, vector<128x128xbf16>, vector<16x128xf32> -> vector<16x128xf32>
    %c0_3 = arith.constant 0 : index
    %c0_4 = arith.constant 0 : index
    %3 = vector.load %arg3[%c0_3, %c0_4] : memref<1x128xf32, #tpu.memory_space<vmem>>, vector<1x128xf32>
    %4 = vector.broadcast %3 : vector<1x128xf32> to vector<16x128xf32>
    %5 = arith.addf %2, %4 : vector<16x128xf32>
    %cst_5 = arith.constant 1.702000e+00 : f32
    %6 = vector.broadcast %cst_5 : f32 to vector<16x128xf32>
    %7 = arith.mulf %6, %5 : vector<16x128xf32>
    %8 = arith.negf %7 : vector<16x128xf32>
    %9 = math.exp %8 : vector<16x128xf32>
    %cst_6 = arith.constant 1.000000e+00 : f32
    %10 = vector.broadcast %cst_6 : f32 to vector<16x128xf32>
    %11 = arith.addf %10, %9 : vector<16x128xf32>
    %12 = arith.divf %10, %11 : vector<16x128xf32>
    %13 = arith.mulf %5, %12 : vector<16x128xf32>
    %14 = arith.truncf %13 : vector<16x128xf32> to vector<16x128xbf16>
    %c0_7 = arith.constant 0 : index
    %c0_8 = arith.constant 0 : index
    %15 = vector.load %arg4[%c0_7, %c0_8] : memref<128x128xbf16, #tpu.memory_space<vmem>>, vector<128x128xbf16>
    %cst_9 = arith.constant dense<0.000000e+00> : vector<16x128xf32>
    %16 = tpu.matmul %14, %15, %cst_9 {dimension_numbers = #tpu.dot_dimension_numbers<[1], [0], [0], [1], [0, 0, 1, 1], [], []>} : vector<16x128xbf16>, vector<128x128xbf16>, vector<16x128xf32> -> vector<16x128xf32>
    %c0_10 = arith.constant 0 : index
    %c0_11 = arith.constant 0 : index
    %17 = vector.load %arg5[%c0_10, %c0_11] : memref<1x128xf32, #tpu.memory_space<vmem>>, vector<1x128xf32>
    %18 = vector.broadcast %17 : vector<1x128xf32> to vector<16x128xf32>
    %19 = arith.addf %16, %18 : vector<16x128xf32>
    %cst_12 = arith.constant 1.702000e+00 : f32
    %20 = vector.broadcast %cst_12 : f32 to vector<16x128xf32>
    %21 = arith.mulf %20, %19 : vector<16x128xf32>
    %22 = arith.negf %21 : vector<16x128xf32>
    %23 = math.exp %22 : vector<16x128xf32>
    %cst_13 = arith.constant 1.000000e+00 : f32
    %24 = vector.broadcast %cst_13 : f32 to vector<16x128xf32>
    %25 = arith.addf %24, %23 : vector<16x128xf32>
    %26 = arith.divf %24, %25 : vector<16x128xf32>
    %27 = arith.mulf %19, %26 : vector<16x128xf32>
    %28 = arith.truncf %27 : vector<16x128xf32> to vector<16x128xbf16>
    %c0_14 = arith.constant 0 : index
    %c0_15 = arith.constant 0 : index
    %29 = vector.load %arg6[%c0_14, %c0_15] : memref<128x128xbf16, #tpu.memory_space<vmem>>, vector<128x128xbf16>
    %cst_16 = arith.constant dense<0.000000e+00> : vector<16x128xf32>
    %30 = tpu.matmul %28, %29, %cst_16 {dimension_numbers = #tpu.dot_dimension_numbers<[1], [0], [0], [1], [0, 0, 1, 1], [], []>} : vector<16x128xbf16>, vector<128x128xbf16>, vector<16x128xf32> -> vector<16x128xf32>
    %c0_17 = arith.constant 0 : index
    %c0_18 = arith.constant 0 : index
    %31 = vector.load %arg7[%c0_17, %c0_18] : memref<1x128xf32, #tpu.memory_space<vmem>>, vector<1x128xf32>
    %32 = vector.broadcast %31 : vector<1x128xf32> to vector<16x128xf32>
    %33 = arith.addf %30, %32 : vector<16x128xf32>
    %cst_19 = arith.constant 1.702000e+00 : f32
    %34 = vector.broadcast %cst_19 : f32 to vector<16x128xf32>
    %35 = arith.mulf %34, %33 : vector<16x128xf32>
    %36 = arith.negf %35 : vector<16x128xf32>
    %37 = math.exp %36 : vector<16x128xf32>
    %cst_20 = arith.constant 1.000000e+00 : f32
    %38 = vector.broadcast %cst_20 : f32 to vector<16x128xf32>
    %39 = arith.addf %38, %37 : vector<16x128xf32>
    %40 = arith.divf %38, %39 : vector<16x128xf32>
    %41 = arith.mulf %33, %40 : vector<16x128xf32>
    %42 = arith.truncf %41 : vector<16x128xf32> to vector<16x128xbf16>
    %c0_21 = arith.constant 0 : index
    %c0_22 = arith.constant 0 : index
    %43 = vector.load %arg8[%c0_21, %c0_22] : memref<128x128xbf16, #tpu.memory_space<vmem>>, vector<128x128xbf16>
    %cst_23 = arith.constant dense<0.000000e+00> : vector<16x128xf32>
    %44 = tpu.matmul %42, %43, %cst_23 {dimension_numbers = #tpu.dot_dimension_numbers<[1], [0], [0], [1], [0, 0, 1, 1], [], []>} : vector<16x128xbf16>, vector<128x128xbf16>, vector<16x128xf32> -> vector<16x128xf32>
    %c0_24 = arith.constant 0 : index
    %c0_25 = arith.constant 0 : index
    %45 = vector.load %arg9[%c0_24, %c0_25] : memref<1x128xf32, #tpu.memory_space<vmem>>, vector<1x128xf32>
    %46 = vector.broadcast %45 : vector<1x128xf32> to vector<16x128xf32>
    %47 = arith.addf %44, %46 : vector<16x128xf32>
    %cst_26 = arith.constant 1.702000e+00 : f32
    %48 = vector.broadcast %cst_26 : f32 to vector<16x128xf32>
    %49 = arith.mulf %48, %47 : vector<16x128xf32>
    %50 = arith.negf %49 : vector<16x128xf32>
    %51 = math.exp %50 : vector<16x128xf32>
    %cst_27 = arith.constant 1.000000e+00 : f32
    %52 = vector.broadcast %cst_27 : f32 to vector<16x128xf32>
    %53 = arith.addf %52, %51 : vector<16x128xf32>
    %54 = arith.divf %52, %53 : vector<16x128xf32>
    %55 = arith.mulf %47, %54 : vector<16x128xf32>
    %56 = arith.truncf %55 : vector<16x128xf32> to vector<16x128xbf16>
    %c0_28 = arith.constant 0 : index
    %c0_29 = arith.constant 0 : index
    %57 = vector.load %arg10[%c0_28, %c0_29] : memref<128x128xbf16, #tpu.memory_space<vmem>>, vector<128x128xbf16>
    %cst_30 = arith.constant dense<0.000000e+00> : vector<16x128xf32>
    %58 = tpu.matmul %56, %57, %cst_30 {dimension_numbers = #tpu.dot_dimension_numbers<[1], [0], [0], [1], [0, 0, 1, 1], [], []>} : vector<16x128xbf16>, vector<128x128xbf16>, vector<16x128xf32> -> vector<16x128xf32>
    %c0_31 = arith.constant 0 : index
    %c0_32 = arith.constant 0 : index
    %59 = vector.load %arg11[%c0_31, %c0_32] : memref<1x128xf32, #tpu.memory_space<vmem>>, vector<1x128xf32>
    %60 = vector.broadcast %59 : vector<1x128xf32> to vector<16x128xf32>
    %61 = arith.addf %58, %60 : vector<16x128xf32>
    %62 = arith.truncf %61 : vector<16x128xf32> to vector<16x128xbf16>
    %c0_33 = arith.constant 0 : index
    %c0_34 = arith.constant 0 : index
    %63 = vector.load %arg12[%c0_33, %c0_34] : memref<32x128xbf16, #tpu.memory_space<vmem>>, vector<16x128xbf16>
    tpu.vector_store %arg12[%c0_33, %c0_34], %62 {strides = array<i32>} : memref<32x128xbf16, #tpu.memory_space<vmem>>, vector<16x128xbf16>,
    %c16 = arith.constant 16 : index
    %c0_35 = arith.constant 0 : index
    %64 = vector.load %arg1[%c16, %c0_35] : memref<32x128xbf16, #tpu.memory_space<vmem>>, vector<16x128xbf16>
    %c0_36 = arith.constant 0 : index
    %c0_37 = arith.constant 0 : index
    %65 = vector.load %arg2[%c0_36, %c0_37] : memref<128x128xbf16, #tpu.memory_space<vmem>>, vector<128x128xbf16>
    %cst_38 = arith.constant dense<0.000000e+00> : vector<16x128xf32>
    %66 = tpu.matmul %64, %65, %cst_38 {dimension_numbers = #tpu.dot_dimension_numbers<[1], [0], [0], [1], [0, 0, 1, 1], [], []>} : vector<16x128xbf16>, vector<128x128xbf16>, vector<16x128xf32> -> vector<16x128xf32>
    %c0_39 = arith.constant 0 : index
    %c0_40 = arith.constant 0 : index
    %67 = vector.load %arg3[%c0_39, %c0_40] : memref<1x128xf32, #tpu.memory_space<vmem>>, vector<1x128xf32>
    %68 = vector.broadcast %67 : vector<1x128xf32> to vector<16x128xf32>
    %69 = arith.addf %66, %68 : vector<16x128xf32>
    %cst_41 = arith.constant 1.702000e+00 : f32
    %70 = vector.broadcast %cst_41 : f32 to vector<16x128xf32>
    %71 = arith.mulf %70, %69 : vector<16x128xf32>
    %72 = arith.negf %71 : vector<16x128xf32>
    %73 = math.exp %72 : vector<16x128xf32>
    %cst_42 = arith.constant 1.000000e+00 : f32
    %74 = vector.broadcast %cst_42 : f32 to vector<16x128xf32>
    %75 = arith.addf %74, %73 : vector<16x128xf32>
    %76 = arith.divf %74, %75 : vector<16x128xf32>
    %77 = arith.mulf %69, %76 : vector<16x128xf32>
    %78 = arith.truncf %77 : vector<16x128xf32> to vector<16x128xbf16>
    %c0_43 = arith.constant 0 : index
    %c0_44 = arith.constant 0 : index
    %79 = vector.load %arg4[%c0_43, %c0_44] : memref<128x128xbf16, #tpu.memory_space<vmem>>, vector<128x128xbf16>
    %cst_45 = arith.constant dense<0.000000e+00> : vector<16x128xf32>
    %80 = tpu.matmul %78, %79, %cst_45 {dimension_numbers = #tpu.dot_dimension_numbers<[1], [0], [0], [1], [0, 0, 1, 1], [], []>} : vector<16x128xbf16>, vector<128x128xbf16>, vector<16x128xf32> -> vector<16x128xf32>
    %c0_46 = arith.constant 0 : index
    %c0_47 = arith.constant 0 : index
    %81 = vector.load %arg5[%c0_46, %c0_47] : memref<1x128xf32, #tpu.memory_space<vmem>>, vector<1x128xf32>
    %82 = vector.broadcast %81 : vector<1x128xf32> to vector<16x128xf32>
    %83 = arith.addf %80, %82 : vector<16x128xf32>
    %cst_48 = arith.constant 1.702000e+00 : f32
    %84 = vector.broadcast %cst_48 : f32 to vector<16x128xf32>
    %85 = arith.mulf %84, %83 : vector<16x128xf32>
    %86 = arith.negf %85 : vector<16x128xf32>
    %87 = math.exp %86 : vector<16x128xf32>
    %cst_49 = arith.constant 1.000000e+00 : f32
    %88 = vector.broadcast %cst_49 : f32 to vector<16x128xf32>
    %89 = arith.addf %88, %87 : vector<16x128xf32>
    %90 = arith.divf %88, %89 : vector<16x128xf32>
    %91 = arith.mulf %83, %90 : vector<16x128xf32>
    %92 = arith.truncf %91 : vector<16x128xf32> to vector<16x128xbf16>
    %c0_50 = arith.constant 0 : index
    %c0_51 = arith.constant 0 : index
    %93 = vector.load %arg6[%c0_50, %c0_51] : memref<128x128xbf16, #tpu.memory_space<vmem>>, vector<128x128xbf16>
    %cst_52 = arith.constant dense<0.000000e+00> : vector<16x128xf32>
    %94 = tpu.matmul %92, %93, %cst_52 {dimension_numbers = #tpu.dot_dimension_numbers<[1], [0], [0], [1], [0, 0, 1, 1], [], []>} : vector<16x128xbf16>, vector<128x128xbf16>, vector<16x128xf32> -> vector<16x128xf32>
    %c0_53 = arith.constant 0 : index
    %c0_54 = arith.constant 0 : index
    %95 = vector.load %arg7[%c0_53, %c0_54] : memref<1x128xf32, #tpu.memory_space<vmem>>, vector<1x128xf32>
    %96 = vector.broadcast %95 : vector<1x128xf32> to vector<16x128xf32>
    %97 = arith.addf %94, %96 : vector<16x128xf32>
    %cst_55 = arith.constant 1.702000e+00 : f32
    %98 = vector.broadcast %cst_55 : f32 to vector<16x128xf32>
    %99 = arith.mulf %98, %97 : vector<16x128xf32>
    %100 = arith.negf %99 : vector<16x128xf32>
    %101 = math.exp %100 : vector<16x128xf32>
    %cst_56 = arith.constant 1.000000e+00 : f32
    %102 = vector.broadcast %cst_56 : f32 to vector<16x128xf32>
    %103 = arith.addf %102, %101 : vector<16x128xf32>
    %104 = arith.divf %102, %103 : vector<16x128xf32>
    %105 = arith.mulf %97, %104 : vector<16x128xf32>
    %106 = arith.truncf %105 : vector<16x128xf32> to vector<16x128xbf16>
    %c0_57 = arith.constant 0 : index
    %c0_58 = arith.constant 0 : index
    %107 = vector.load %arg8[%c0_57, %c0_58] : memref<128x128xbf16, #tpu.memory_space<vmem>>, vector<128x128xbf16>
    %cst_59 = arith.constant dense<0.000000e+00> : vector<16x128xf32>
    %108 = tpu.matmul %106, %107, %cst_59 {dimension_numbers = #tpu.dot_dimension_numbers<[1], [0], [0], [1], [0, 0, 1, 1], [], []>} : vector<16x128xbf16>, vector<128x128xbf16>, vector<16x128xf32> -> vector<16x128xf32>
    %c0_60 = arith.constant 0 : index
    %c0_61 = arith.constant 0 : index
    %109 = vector.load %arg9[%c0_60, %c0_61] : memref<1x128xf32, #tpu.memory_space<vmem>>, vector<1x128xf32>
    %110 = vector.broadcast %109 : vector<1x128xf32> to vector<16x128xf32>
    %111 = arith.addf %108, %110 : vector<16x128xf32>
    %cst_62 = arith.constant 1.702000e+00 : f32
    %112 = vector.broadcast %cst_62 : f32 to vector<16x128xf32>
    %113 = arith.mulf %112, %111 : vector<16x128xf32>
    %114 = arith.negf %113 : vector<16x128xf32>
    %115 = math.exp %114 : vector<16x128xf32>
    %cst_63 = arith.constant 1.000000e+00 : f32
    %116 = vector.broadcast %cst_63 : f32 to vector<16x128xf32>
    %117 = arith.addf %116, %115 : vector<16x128xf32>
    %118 = arith.divf %116, %117 : vector<16x128xf32>
    %119 = arith.mulf %111, %118 : vector<16x128xf32>
    %120 = arith.truncf %119 : vector<16x128xf32> to vector<16x128xbf16>
    %c0_64 = arith.constant 0 : index
    %c0_65 = arith.constant 0 : index
    %121 = vector.load %arg10[%c0_64, %c0_65] : memref<128x128xbf16, #tpu.memory_space<vmem>>, vector<128x128xbf16>
    %cst_66 = arith.constant dense<0.000000e+00> : vector<16x128xf32>
    %122 = tpu.matmul %120, %121, %cst_66 {dimension_numbers = #tpu.dot_dimension_numbers<[1], [0], [0], [1], [0, 0, 1, 1], [], []>} : vector<16x128xbf16>, vector<128x128xbf16>, vector<16x128xf32> -> vector<16x128xf32>
    %c0_67 = arith.constant 0 : index
    %c0_68 = arith.constant 0 : index
    %123 = vector.load %arg11[%c0_67, %c0_68] : memref<1x128xf32, #tpu.memory_space<vmem>>, vector<1x128xf32>
    %124 = vector.broadcast %123 : vector<1x128xf32> to vector<16x128xf32>
    %125 = arith.addf %122, %124 : vector<16x128xf32>
    %126 = arith.truncf %125 : vector<16x128xf32> to vector<16x128xbf16>
    %c16_69 = arith.constant 16 : index
    %c0_70 = arith.constant 0 : index
    %127 = vector.load %arg12[%c16_69, %c0_70] : memref<32x128xbf16, #tpu.memory_space<vmem>>, vector<16x128xbf16>
    tpu.vector_store %arg12[%c16_69, %c0_70], %126 {strides = array<i32>} : memref<32x128xbf16, #tpu.memory_space<vmem>>, vector<16x128xbf16>,
    return
  }
  func.func @transform_0(%arg0: i32) -> (i32, i32) {
    %c0_i32 = arith.constant 0 : i32
    %c0_i32_0 = arith.constant 0 : i32
    return %arg0, %c0_i32 : i32, i32
  }
  func.func @transform_1(%arg0: i32) -> (i32, i32) {
    %c0_i32 = arith.constant 0 : i32
    %c0_i32_0 = arith.constant 0 : i32
    %c0_i32_1 = arith.constant 0 : i32
    return %c0_i32, %c0_i32_0 : i32, i32
  }
  func.func @transform_2(%arg0: i32) -> (i32, i32) {
    %c0_i32 = arith.constant 0 : i32
    %c0_i32_0 = arith.constant 0 : i32
    %c0_i32_1 = arith.constant 0 : i32
    return %c0_i32, %c0_i32_0 : i32, i32
  }
  func.func @transform_3(%arg0: i32) -> (i32, i32) {
    %c0_i32 = arith.constant 0 : i32
    %c0_i32_0 = arith.constant 0 : i32
    %c0_i32_1 = arith.constant 0 : i32
    return %c0_i32, %c0_i32_0 : i32, i32
  }
  func.func @transform_4(%arg0: i32) -> (i32, i32) {
    %c0_i32 = arith.constant 0 : i32
    %c0_i32_0 = arith.constant 0 : i32
    %c0_i32_1 = arith.constant 0 : i32
    return %c0_i32, %c0_i32_0 : i32, i32
  }
  func.func @transform_5(%arg0: i32) -> (i32, i32) {
    %c0_i32 = arith.constant 0 : i32
    %c0_i32_0 = arith.constant 0 : i32
    %c0_i32_1 = arith.constant 0 : i32
    return %c0_i32, %c0_i32_0 : i32, i32
  }
  func.func @transform_6(%arg0: i32) -> (i32, i32) {
    %c0_i32 = arith.constant 0 : i32
    %c0_i32_0 = arith.constant 0 : i32
    %c0_i32_1 = arith.constant 0 : i32
    return %c0_i32, %c0_i32_0 : i32, i32
  }
  func.func @transform_7(%arg0: i32) -> (i32, i32) {
    %c0_i32 = arith.constant 0 : i32
    %c0_i32_0 = arith.constant 0 : i32
    %c0_i32_1 = arith.constant 0 : i32
    return %c0_i32, %c0_i32_0 : i32, i32
  }
  func.func @transform_8(%arg0: i32) -> (i32, i32) {
    %c0_i32 = arith.constant 0 : i32
    %c0_i32_0 = arith.constant 0 : i32
    %c0_i32_1 = arith.constant 0 : i32
    return %c0_i32, %c0_i32_0 : i32, i32
  }
  func.func @transform_9(%arg0: i32) -> (i32, i32) {
    %c0_i32 = arith.constant 0 : i32
    %c0_i32_0 = arith.constant 0 : i32
    %c0_i32_1 = arith.constant 0 : i32
    return %c0_i32, %c0_i32_0 : i32, i32
  }
  func.func @transform_10(%arg0: i32) -> (i32, i32) {
    %c0_i32 = arith.constant 0 : i32
    %c0_i32_0 = arith.constant 0 : i32
    %c0_i32_1 = arith.constant 0 : i32
    return %c0_i32, %c0_i32_0 : i32, i32
  }
  func.func @transform_11(%arg0: i32) -> (i32, i32) {
    %c0_i32 = arith.constant 0 : i32
    %c0_i32_0 = arith.constant 0 : i32
    return %arg0, %c0_i32 : i32, i32
  }
}

</mosaic_0001>

<bundles_post_ra>
// kernel: tpu_custom_call.1
= control target key start
LH: loop header
LB: loop body
LE: loop exit
PB: predicated region body
PF: predicated region fallthrough
CT: control target
= control target key end

     0   :  { %16 = vsyncpa [#allocation3], 0  ;;  %s2514_s0 = inlined_call_operand.hbm [shape: bf16[32,128], index: 0, kind: input, shape index: {}]   ;;  %s2515_s1 = inlined_call_operand.hbm [shape: bf16[128,128], index: 1, kind: input, shape index: {}]   ;;  %s2516_s2 = inlined_call_operand.vmem [shape: f32[1,128], index: 2, kind: input, shape index: {}]   ;;  %s2517_s3 = inlined_call_operand.hbm [shape: bf16[128,128], index: 3, kind: input, shape index: {}]   ;;  %s2518_s4 = inlined_call_operand.vmem [shape: f32[1,128], index: 4, kind: input, shape index: {}]   ;;  %s2519_s5 = inlined_call_operand.hbm [shape: bf16[128,128], index: 5, kind: input, shape index: {}]   ;;  %s2520_s6 = inlined_call_operand.vmem [shape: f32[1,128], index: 6, kind: input, shape index: {}]   ;;  %s2521_s7 = inlined_call_operand.hbm [shape: bf16[128,128], index: 7, kind: input, shape index: {}]   ;;  %s2522_s8 = inlined_call_operand.vmem [shape: f32[1,128], index: 8, kind: input, shape index: {}]   ;;  %s2523_s9 = inlined_call_operand.hbm [shape: bf16[128,128], index: 9, kind: input, shape index: {}]   ;;  %s2524_s10 = inlined_call_operand.vmem [shape: f32[1,128], index: 10, kind: input, shape index: {}]   ;;  %s2525_s11 = inlined_call_operand.hbm [shape: bf16[32,128], index: 11, kind: output, shape index: {}]  }
   0x1   :  { %17 = vsyncpa [#allocation6], 0 }
   0x2   :  { %18 = vsyncpa [#allocation9], 0 }
   0x3   :  { %19 = vsyncpa [#allocation12], 0 }
   0x4   :  { %20 = vsyncpa [#allocation4], 0  ;;  %s2172_s17 = smov [#allocation5]   ;;  %s2173_s19 = smov [#allocation8]  }
   0x5   :  { %s38_s18 = sshll.u32 %s2172_s17, 4  ;;  %s66_s20 = sshll.u32 %s2173_s19, 4  ;;  %s39_s18 = int_to_ptr.vmem [resolvable:$true] %s38_s18  ;;  %s2243_s20 = int_to_ptr.vmem [resolvable:$true] %s66_s20 }
   0x6   :  { %s2008_s23 = scalar_lea.hbm %s2515_s1, 1024 }
   0x7   :  { %p2009_p0 = scmp.ne.s32.totalorder %s2515_s1, %s2008_s23  ;;  %p2012_p1 = scmp.lt.u32.totalorder %s2008_s23, %s2515_s1 }
   0x9   :  { %p2014_p2 = pnand %p2012_p1, %p2009_p0 }
   0xb   :  { %2017 = shalt.err (!%p2014_p2)
}
   0xc   :  { %s2018_s28 = scalar_lea.vmem %s39_s18, 1024  ;;  %p2023_p4 = scmp.lt.s32.totalorder %s39_s18, %s39_s18 }
   0xd   :  { %p2019_p3 = scmp.ne.s32.totalorder %s39_s18, %s2018_s28  ;;  %p2024_p5 = scmp.lt.s32.totalorder %s2018_s28, %s2018_s28 }
   0xf   :  { %p2025_p6 = por %p2024_p5, %p2023_p4 }
  0x11   :  { %p2026_p7 = pnand %p2025_p6, %p2019_p3 }
  0x13   :  { %2029 = shalt.err (!%p2026_p7)
}
  0x14   :  { %s2174_s29 = smov 64   ;;  %s2175_s30 = smov 4  }
  0x15   :  { %44 = dma.hbm_to_vmem [thread:$0]  %s2515_s1, 1024, %s39_s18, [#allocation6], %s2174_s29, %s2174_s29, %s2175_s30  }
  0x16   :  { %s2030_s16 = scalar_lea.hbm %s2519_s5, 1024 }
  0x17   :  { %p2031_p8 = scmp.ne.s32.totalorder %s2519_s5, %s2030_s16  ;;  %p2034_p9 = scmp.lt.u32.totalorder %s2030_s16, %s2519_s5 }
  0x19   :  { %p2036_p10 = pnand %p2034_p9, %p2031_p8 }
  0x1b   :  { %2039 = shalt.err (!%p2036_p10)
}
  0x1c   :  { %s2040_s23 = scalar_lea.vmem %s2243_s20, 1024  ;;  %p2045_p12 = scmp.lt.s32.totalorder %s2243_s20, %s2243_s20 }
  0x1d   :  { %p2041_p11 = scmp.ne.s32.totalorder %s2243_s20, %s2040_s23  ;;  %p2046_p13 = scmp.lt.s32.totalorder %s2040_s23, %s2040_s23 }
  0x1f   :  { %p2047_p0 = por %p2046_p13, %p2045_p12 }
  0x21   :  { %p2048_p1 = pnand %p2047_p0, %p2041_p11 }
  0x23   :  { %2051 = shalt.err (!%p2048_p1)
}
  0x24   :  { %72 = dma.hbm_to_vmem [thread:$0]  %s2519_s5, 1024, %s2243_s20, [#allocation9], %s2174_s29, %s2174_s29, %s2175_s30  }
  0x25   :  { %s2176_s24 = smov [#allocation2]   ;;  %s2177_s26 = smov [#allocation7]  }
  0x26   :  { %s26_s25 = sshll.u32 %s2176_s24, 4  ;;  %s52_s27 = sshll.u32 %s2177_s26, 4  ;;  %s27_s25 = int_to_ptr.vmem [resolvable:$true] %s26_s25  ;;  %s2280_s27 = int_to_ptr.vmem [resolvable:$true] %s52_s27 }
  0x27   :  { %s2052_s13 = scalar_lea.hbm %s2514_s0, 256 }
  0x28   :  { %p2053_p2 = scmp.ne.s32.totalorder %s2514_s0, %s2052_s13  ;;  %p2056_p3 = scmp.lt.u32.totalorder %s2052_s13, %s2514_s0 }
  0x2a   :  { %p2058_p4 = pnand %p2056_p3, %p2053_p2 }
  0x2c   :  { %2061 = shalt.err (!%p2058_p4)
}
  0x2d   :  { %s2062_s5 = scalar_lea.vmem %s27_s25, 256  ;;  %p2067_p6 = scmp.lt.s32.totalorder %s27_s25, %s27_s25 }
  0x2e   :  { %p2063_p5 = scmp.ne.s32.totalorder %s27_s25, %s2062_s5  ;;  %p2068_p7 = scmp.lt.s32.totalorder %s2062_s5, %s2062_s5 }
  0x30   :  { %p2069_p8 = por %p2068_p7, %p2067_p6 }
  0x32   :  { %p2070_p9 = pnand %p2069_p8, %p2063_p5 }
  0x34   :  { %2073 = shalt.err (!%p2070_p9)
}
  0x35   :  { %32 = dma.hbm_to_vmem [thread:$0]  %s2514_s0, 256, %s27_s25, [#allocation3], %s2174_s29, %s2174_s29, %s2175_s30  }
  0x36   :  { %s2074_s23 = scalar_lea.hbm %s2517_s3, 1024 }
  0x37   :  { %p2075_p10 = scmp.ne.s32.totalorder %s2517_s3, %s2074_s23  ;;  %p2078_p11 = scmp.lt.u32.totalorder %s2074_s23, %s2517_s3 }
  0x39   :  { %p2080_p12 = pnand %p2078_p11, %p2075_p10 }
  0x3b   :  { %2083 = shalt.err (!%p2080_p12)
}
  0x3c   :  { %s2084_s28 = scalar_lea.vmem %s2280_s27, 1024  ;;  %p2089_p0 = scmp.lt.s32.totalorder %s2280_s27, %s2280_s27 }
  0x3d   :  { %p2085_p13 = scmp.ne.s32.totalorder %s2280_s27, %s2084_s28  ;;  %p2090_p1 = scmp.lt.s32.totalorder %s2084_s28, %s2084_s28 }
  0x3f   :  { %p2091_p2 = por %p2090_p1, %p2089_p0 }
  0x41   :  { %p2092_p3 = pnand %p2091_p2, %p2085_p13 }
  0x43   :  { %2095 = shalt.err (!%p2092_p3)
}
  0x44   :  { %58 = dma.hbm_to_vmem [thread:$0]  %s2517_s3, 1024, %s2280_s27, [#allocation6], %s2174_s29, %s2174_s29, %s2175_s30  }
  0x45   :  { %s2178_s12 = smov [#allocation10]   ;;  %s2179_s14 = smov [#allocation11]  }
  0x46   :  { %s80_s13 = sshll.u32 %s2178_s12, 4  ;;  %s94_s15 = sshll.u32 %s2179_s14, 4  ;;  %s81_s13 = int_to_ptr.vmem [resolvable:$true] %s80_s13  ;;  %s2317_s15 = int_to_ptr.vmem [resolvable:$true] %s94_s15 }
  0x47   :  { %s2096_s5 = scalar_lea.hbm %s2521_s7, 1024 }
  0x48   :  { %p2097_p4 = scmp.ne.s32.totalorder %s2521_s7, %s2096_s5  ;;  %p2100_p5 = scmp.lt.u32.totalorder %s2096_s5, %s2521_s7 }
  0x4a   :  { %p2102_p6 = pnand %p2100_p5, %p2097_p4 }
  0x4c   :  { %2105 = shalt.err (!%p2102_p6)
}
  0x4d   :  { %s2106_s3 = scalar_lea.vmem %s81_s13, 1024  ;;  %p2111_p8 = scmp.lt.s32.totalorder %s81_s13, %s81_s13 }
  0x4e   :  { %p2107_p7 = scmp.ne.s32.totalorder %s81_s13, %s2106_s3  ;;  %p2112_p9 = scmp.lt.s32.totalorder %s2106_s3, %s2106_s3 }
  0x50   :  { %p2113_p10 = por %p2112_p9, %p2111_p8 }
  0x52   :  { %p2114_p11 = pnand %p2113_p10, %p2107_p7 }
  0x54   :  { %2117 = shalt.err (!%p2114_p11)
}
  0x55   :  { %86 = dma.hbm_to_vmem [thread:$0]  %s2521_s7, 1024, %s81_s13, [#allocation9], %s2174_s29, %s2174_s29, %s2175_s30  }
  0x56   :  { %s2118_s24 = scalar_lea.hbm %s2523_s9, 1024 }
  0x57   :  { %p2119_p12 = scmp.ne.s32.totalorder %s2523_s9, %s2118_s24  ;;  %p2122_p13 = scmp.lt.u32.totalorder %s2118_s24, %s2523_s9 }
  0x59   :  { %p2124_p0 = pnand %p2122_p13, %p2119_p12 }
  0x5b   :  { %2127 = shalt.err (!%p2124_p0)
}
  0x5c   :  { %s2128_s12 = scalar_lea.vmem %s2317_s15, 1024  ;;  %p2133_p2 = scmp.lt.s32.totalorder %s2317_s15, %s2317_s15 }
  0x5d   :  { %p2129_p1 = scmp.ne.s32.totalorder %s2317_s15, %s2128_s12  ;;  %p2134_p3 = scmp.lt.s32.totalorder %s2128_s12, %s2128_s12 }
  0x5f   :  { %p2135_p4 = por %p2134_p3, %p2133_p2 }
  0x61   :  { %p2136_p5 = pnand %p2135_p4, %p2129_p1 }
  0x63   :  { %2139 = shalt.err (!%p2136_p5)
}
  0x64   :  { %100 = dma.hbm_to_vmem [thread:$0]  %s2523_s9, 1024, %s2317_s15, [#allocation12], %s2174_s29, %s2174_s29, %s2175_s30  }
  0x65   :  { %2162 = dma.done.wait [#allocation3], 256  }
  0x66   :  { %2163 = vsyncadd [#allocation3], 4294967040 }
  0x67   :  { %2164 = dma.done.wait [#allocation6], 2048  }
  0x68   :  { %2165 = vsyncadd [#allocation6], 4294965248 }
  0x69   :  { %2166 = dma.done.wait [#allocation9], 2048  }
  0x6a   :  { %2167 = vsyncadd [#allocation9], 4294965248 }
  0x6b   :  { %2168 = dma.done.wait [#allocation12], 1024  }
  0x6c   :  { %2169 = vsyncadd [#allocation12], 4294966272  ;;  %v2180_v0 = vmov 0.0   ;;  %vm2181_vm0 = vmmov 0   ;;  %v1862_v1 = vld [vmem:[#allocation5] sm:$0xff]   ;;  %v1863_v2 = vld [vmem:[#allocation5 + $0x8] sm:$0xff]  }
  0x6d   :  { %1651 = vmatprep.subr.bf16.mxu0 %v2180_v0  ;;  %1667 = vmatprep.mubr.msk.bf16.mxu0 %vm2181_vm0, %v2180_v0  ;;  %v1864_v3 = vld [vmem:[#allocation5 + $0x10] sm:$0xff]   ;;  %v1865_v4 = vld [vmem:[#allocation5 + $0x18] sm:$0xff]   ;;  %v1866_v5 = vld [vmem:[#allocation5 + $0x20] sm:$0xff]  }
  0x6e   :  { %1671 = vmatprep.subr.bf16.mxu1 %v2180_v0  ;;  %1687 = vmatprep.mubr.msk.bf16.mxu1 %vm2181_vm0, %v2180_v0  ;;  %v1867_v6 = vld [vmem:[#allocation5 + $0x28] sm:$0xff]   ;;  %v1868_v7 = vld [vmem:[#allocation5 + $0x30] sm:$0xff]   ;;  %v1869_v8 = vld [vmem:[#allocation5 + $0x38] sm:$0xff]  }
  0x6f   :  { %1652 = vmatpush3.bf16.msra.mxu0 %v1862_v1  ;;  %v1870_v9 = vld [vmem:[#allocation2] sm:$0xff]   ;;  %v1871_v10 = vld [vmem:[#allocation7] sm:$0xff]   ;;  %v1872_v11 = vld [vmem:[#allocation7 + $0x8] sm:$0xff]  }
  0x70   :  { %1653 = vmatprep.subr.bf16.mxu0 %v2180_v0  ;;  %1672 = vmatpush3.bf16.msra.mxu1 %v1871_v10  ;;  %v1873_v12 = vld [vmem:[#allocation7 + $0x10] sm:$0xff]   ;;  %v1874_v13 = vld [vmem:[#allocation7 + $0x18] sm:$0xff]   ;;  %v1875_v14 = vld [vmem:[#allocation7 + $0x20] sm:$0xff]  }
  0x71   :  { %1673 = vmatprep.subr.bf16.mxu1 %v2180_v0  ;;  %v1876_v15 = vld [vmem:[#allocation7 + $0x28] sm:$0xff]   ;;  %v1877_v16 = vld [vmem:[#allocation7 + $0x30] sm:$0xff]   ;;  %v1878_v17 = vld [vmem:[#allocation7 + $0x38] sm:$0xff]  }
  0x72   :  { %v2381_v18 = vld [vmem:[%s2516_s2] ss:$0 sm:$0xff]  ;;  %v1879_v38 = vld [vmem:[#allocation8] sm:$0xff]   ;;  %v1880_v39 = vld [vmem:[#allocation8 + $0x8] sm:$0xff]  }
  0x73   :  { %1654 = vmatpush3.bf16.msra.mxu0 %v1863_v2  ;;  %v1881_v40 = vld [vmem:[#allocation8 + $0x10] sm:$0xff]   ;;  %v1882_v41 = vld [vmem:[#allocation8 + $0x18] sm:$0xff]   ;;  %v1883_v42 = vld [vmem:[#allocation8 + $0x20] sm:$0xff]  }
  0x74   :  { %1655 = vmatprep.subr.bf16.mxu0 %v2180_v0  ;;  %1674 = vmatpush3.bf16.msra.mxu1 %v1872_v11  ;;  %v1884_v43 = vld [vmem:[#allocation8 + $0x28] sm:$0xff]   ;;  %v1885_v44 = vld [vmem:[#allocation8 + $0x30] sm:$0xff]   ;;  %v1886_v45 = vld [vmem:[#allocation8 + $0x38] sm:$0xff]  }
  0x75   :  { %1675 = vmatprep.subr.bf16.mxu1 %v2180_v0  ;;  %v2398_v46 = vld [vmem:[%s2518_s4] ss:$0 sm:$0xff]  ;;  %v1894_v10 = vld [vmem:[#allocation10 + $0x38] sm:$0xff]  }
  0x76   :  { %v2415_v11 = vld [vmem:[%s2520_s6] ss:$0 sm:$0xff] }
  0x77   :  { %1656 = vmatpush3.bf16.msra.mxu0 %v1864_v3  ;;  %v1887_v3 = vld [vmem:[#allocation10] sm:$0xff]  }
  0x78   :  { %1657 = vmatprep.subr.bf16.mxu0 %v2180_v0  ;;  %1676 = vmatpush3.bf16.msra.mxu1 %v1873_v12 }
  0x79   :  { %1677 = vmatprep.subr.bf16.mxu1 %v2180_v0 }
  0x7b   :  { %1658 = vmatpush3.bf16.msra.mxu0 %v1865_v4  ;;  %v1888_v4 = vld [vmem:[#allocation10 + $0x8] sm:$0xff]  }
  0x7c   :  { %1659 = vmatprep.subr.bf16.mxu0 %v2180_v0  ;;  %1678 = vmatpush3.bf16.msra.mxu1 %v1874_v13 }
  0x7d   :  { %1679 = vmatprep.subr.bf16.mxu1 %v2180_v0 }
  0x7f   :  { %1660 = vmatpush3.bf16.msra.mxu0 %v1866_v5  ;;  %v1889_v5 = vld [vmem:[#allocation10 + $0x10] sm:$0xff]  }
  0x80   :  { %1661 = vmatprep.subr.bf16.mxu0 %v2180_v0  ;;  %1680 = vmatpush3.bf16.msra.mxu1 %v1875_v14 }
  0x81   :  { %1681 = vmatprep.subr.bf16.mxu1 %v2180_v0 }
  0x83   :  { %1662 = vmatpush3.bf16.msra.mxu0 %v1867_v6  ;;  %v1890_v6 = vld [vmem:[#allocation10 + $0x18] sm:$0xff]  }
  0x84   :  { %1663 = vmatprep.subr.bf16.mxu0 %v2180_v0  ;;  %1682 = vmatpush3.bf16.msra.mxu1 %v1876_v15 }
  0x85   :  { %1683 = vmatprep.subr.bf16.mxu1 %v2180_v0 }
  0x87   :  { %1664 = vmatpush3.bf16.msra.mxu0 %v1868_v7  ;;  %v1891_v7 = vld [vmem:[#allocation10 + $0x20] sm:$0xff]  }
  0x88   :  { %1665 = vmatprep.subr.bf16.mxu0 %v2180_v0  ;;  %1684 = vmatpush3.bf16.msra.mxu1 %v1877_v16 }
  0x89   :  { %1685 = vmatprep.subr.bf16.mxu1 %v2180_v0 }
  0x8b   :  { %1666 = vmatpush3.bf16.msra.mxu0 %v1869_v8  ;;  %v1892_v8 = vld [vmem:[#allocation10 + $0x28] sm:$0xff]  }
  0x8c   :  { %1691 = vmatprep.subr.bf16.mxu0 %v2180_v0  ;;  %1686 = vmatpush3.bf16.msra.mxu1 %v1878_v17 }
  0x8d   :  { %1711 = vmatprep.subr.bf16.mxu1 %v2180_v0 }
  0x8e   :  { %1668 = vmatmul.mubr.bf16.vlgmr.msra.gmra.mrb[0].mxu0 %v1870_v9  ;;  %v1893_v9 = vld [vmem:[#allocation10 + $0x30] sm:$0xff]  }
  0x8f   :  { %1707 = vmatprep.mubr.msk.bf16.mxu0 %vm2181_vm0, %v2180_v0  ;;  %1692 = vmatpush3.bf16.msra.mxu0 %v1879_v38  ;;  %v1901_v38 = vld [vmem:[#allocation5 + $0x30] sm:$0xff]  }
  0x90   :  { %1693 = vmatprep.subr.bf16.mxu0 %v2180_v0 }
  0x93   :  { %1694 = vmatpush3.bf16.msra.mxu0 %v1880_v39  ;;  %v1902_v39 = vld [vmem:[#allocation5 + $0x38] sm:$0xff]  }
  0x94   :  { %1695 = vmatprep.subr.bf16.mxu0 %v2180_v0 }
  0x97   :  { %1696 = vmatpush3.bf16.msra.mxu0 %v1881_v40  ;;  %v1903_v40 = vld [vmem:[#allocation2 + $0x8] sm:$0xff]  }
  0x98   :  { %1697 = vmatprep.subr.bf16.mxu0 %v2180_v0 }
  0x9b   :  { %1698 = vmatpush3.bf16.msra.mxu0 %v1882_v41  ;;  %v1904_v41 = vld [vmem:[#allocation11] sm:$0xff]  }
  0x9c   :  { %1699 = vmatprep.subr.bf16.mxu0 %v2180_v0 }
  0x9f   :  { %1700 = vmatpush3.bf16.msra.mxu0 %v1883_v42  ;;  %v1905_v42 = vld [vmem:[#allocation11 + $0x8] sm:$0xff]  }
  0xa0   :  { %1701 = vmatprep.subr.bf16.mxu0 %v2180_v0 }
  0xa3   :  { %1702 = vmatpush3.bf16.msra.mxu0 %v1884_v43  ;;  %v1906_v43 = vld [vmem:[#allocation11 + $0x10] sm:$0xff]  }
  0xa4   :  { %1703 = vmatprep.subr.bf16.mxu0 %v2180_v0 }
  0xa7   :  { %1704 = vmatpush3.bf16.msra.mxu0 %v1885_v44  ;;  %v1907_v44 = vld [vmem:[#allocation11 + $0x18] sm:$0xff]  }
  0xa8   :  { %1705 = vmatprep.subr.bf16.mxu0 %v2180_v0 }
  0xab   :  { %1706 = vmatpush3.bf16.msra.mxu0 %v1886_v45  ;;  %v1908_v45 = vld [vmem:[#allocation11 + $0x20] sm:$0xff]  }
  0xac   :  { %1731 = vmatprep.subr.bf16.mxu0 %v2180_v0 }
 0x161   :  { %v235_v19 = vpop.f32.mrb[0].mxu0 }
 0x162   :  { %v236_v20 = vadd.f32 %v2381_v18, %v235_v19  ;;  %v1669_v21 = vpop.f32.mrb[1].mxu0 }
 0x163   :  { %v238_v22 = vpop.f32.mrb[2].mxu0 }
 0x164   :  { %v1444_v23 = vmul.f32 -1.702, %v236_v20  ;;  %v239_v24 = vadd.f32 %v2381_v18, %v238_v22  ;;  %v1670_v25 = vpop.f32.mrb[3].mxu0 }
 0x166   :  { %v246_v26 = vmul.f32 1.442695, %v1444_v23  ;;  %v1445_v27 = vmul.f32 -1.702, %v239_v24 }
 0x168   :  { %1944 = vpow2.f32 %v246_v26  ;;  %v248_v28 = vmul.f32 1.442695, %v1445_v27 }
 0x16a   :  { %1946 = vpow2.f32 %v248_v28 }
 0x172   :  { %v1945_v29 = vpop.eup %1944 }
 0x173   :  { %v250_v30 = vadd.f32 1.0, %v1945_v29 }
 0x174   :  { %v1947_v31 = vpop.eup %1946 }
 0x175   :  { %1948 = vrcp.f32 %v250_v30  ;;  %v251_v32 = vadd.f32 1.0, %v1947_v31  ;;  %v1895_v31 = vld [vmem:[#allocation5] sm:$0xff]  }
 0x177   :  { %1950 = vrcp.f32 %v251_v32 }
 0x17f   :  { %v1949_v33 = vpop.eup %1948 }
 0x180   :  { %v256_v35 = vmul.f32 %v1949_v33, %v236_v20  ;;  %v1896_v33 = vld [vmem:[#allocation5 + $0x8] sm:$0xff]  }
 0x181   :  { %v1951_v34 = vpop.eup %1950 }
 0x182   :  { %v257_v36 = vmul.f32 %v1951_v34, %v239_v24  ;;  %v1897_v34 = vld [vmem:[#allocation5 + $0x10] sm:$0xff]  }
 0x184   :  { %v258_v37 = vpack.c.bf16 %v257_v36, %v256_v35  ;;  %v1898_v35 = vld [vmem:[#allocation5 + $0x18] sm:$0xff]   ;;  %v1899_v36 = vld [vmem:[#allocation5 + $0x20] sm:$0xff]  }
 0x186   :  { %1688 = vmatmul.mubr.bf16.vlgmr.msra.gmra.mrb[0].mxu1 %v258_v37  ;;  %v1900_v37 = vld [vmem:[#allocation5 + $0x28] sm:$0xff]  }
 0x187   :  { %1727 = vmatprep.mubr.msk.bf16.mxu1 %vm2181_vm0, %v2180_v0  ;;  %1712 = vmatpush3.bf16.msra.mxu1 %v1887_v3 }
 0x188   :  { %1713 = vmatprep.subr.bf16.mxu1 %v2180_v0 }
 0x18b   :  { %1714 = vmatpush3.bf16.msra.mxu1 %v1888_v4 }
 0x18c   :  { %1715 = vmatprep.subr.bf16.mxu1 %v2180_v0 }
 0x18f   :  { %1716 = vmatpush3.bf16.msra.mxu1 %v1889_v5 }
 0x190   :  { %1717 = vmatprep.subr.bf16.mxu1 %v2180_v0 }
 0x193   :  { %1718 = vmatpush3.bf16.msra.mxu1 %v1890_v6 }
 0x194   :  { %1719 = vmatprep.subr.bf16.mxu1 %v2180_v0 }
 0x197   :  { %1720 = vmatpush3.bf16.msra.mxu1 %v1891_v7 }
 0x198   :  { %1721 = vmatprep.subr.bf16.mxu1 %v2180_v0 }
 0x19b   :  { %1722 = vmatpush3.bf16.msra.mxu1 %v1892_v8 }
 0x19c   :  { %1723 = vmatprep.subr.bf16.mxu1 %v2180_v0 }
 0x19f   :  { %1724 = vmatpush3.bf16.msra.mxu1 %v1893_v9 }
 0x1a0   :  { %1725 = vmatprep.subr.bf16.mxu1 %v2180_v0 }
 0x1a3   :  { %1726 = vmatpush3.bf16.msra.mxu1 %v1894_v10  ;;  %v1912_v10 = vld [vmem:[#allocation7] sm:$0xff]  }
 0x1a4   :  { %1751 = vmatprep.subr.bf16.mxu1 %v2180_v0 }
 0x259   :  { %v364_v47 = vpop.f32.mrb[0].mxu1 }
 0x25a   :  { %v365_v48 = vadd.f32 %v2398_v46, %v364_v47  ;;  %v1689_v49 = vpop.f32.mrb[1].mxu1  ;;  %v1909_v47 = vld [vmem:[#allocation11 + $0x28] sm:$0xff]  }
 0x25b   :  { %v367_v50 = vpop.f32.mrb[2].mxu1  ;;  %v1911_v49 = vld [vmem:[#allocation11 + $0x38] sm:$0xff]  }
 0x25c   :  { %v1455_v51 = vmul.f32 -1.702, %v365_v48  ;;  %v368_v52 = vadd.f32 %v2398_v46, %v367_v50  ;;  %v1690_v53 = vpop.f32.mrb[3].mxu1  ;;  %v2442_v50 = vld [vmem:[%s2522_s8] ss:$0 sm:$0xff] }
 0x25e   :  { %v375_v54 = vmul.f32 1.442695, %v1455_v51  ;;  %v1456_v55 = vmul.f32 -1.702, %v368_v52 }
 0x260   :  { %1952 = vpow2.f32 %v375_v54  ;;  %v377_v56 = vmul.f32 1.442695, %v1456_v55 }
 0x262   :  { %1954 = vpow2.f32 %v377_v56 }
 0x26a   :  { %v1953_v57 = vpop.eup %1952 }
 0x26b   :  { %v379_v58 = vadd.f32 1.0, %v1953_v57 }
 0x26c   :  { %v1955_v59 = vpop.eup %1954 }
 0x26d   :  { %1956 = vrcp.f32 %v379_v58  ;;  %v380_v60 = vadd.f32 1.0, %v1955_v59 }
 0x26f   :  { %1958 = vrcp.f32 %v380_v60 }
 0x277   :  { %v1957_v61 = vpop.eup %1956 }
 0x278   :  { %v385_v63 = vmul.f32 %v1957_v61, %v365_v48  ;;  %v1910_v48 = vld [vmem:[#allocation11 + $0x30] sm:$0xff]  }
 0x279   :  { %v1959_v62 = vpop.eup %1958 }
 0x27a   :  { %v386_v1 = vmul.f32 %v1959_v62, %v368_v52 }
 0x27c   :  { %v387_v2 = vpack.c.bf16 %v386_v1, %v385_v63 }
 0x27e   :  { %1708 = vmatmul.mubr.bf16.vlgmr.msra.gmra.mrb[4].mxu0 %v387_v2 }
 0x27f   :  { %1747 = vmatprep.mubr.msk.bf16.mxu0 %vm2181_vm0, %v2180_v0  ;;  %1732 = vmatpush3.bf16.msra.mxu0 %v1904_v41  ;;  %v1926_v41 = vld [vmem:[#allocation8 + $0x30] sm:$0xff]  }
 0x280   :  { %1733 = vmatprep.subr.bf16.mxu0 %v2180_v0 }
 0x283   :  { %1734 = vmatpush3.bf16.msra.mxu0 %v1905_v42  ;;  %v1927_v42 = vld [vmem:[#allocation8 + $0x38] sm:$0xff]  }
 0x284   :  { %1735 = vmatprep.subr.bf16.mxu0 %v2180_v0 }
 0x287   :  { %1736 = vmatpush3.bf16.msra.mxu0 %v1906_v43  ;;  %v2471_v43 = vld [vmem:[%s2524_s10] ss:$0 sm:$0xff]  ;;  %s2182_s10 = smov [#allocation13]  }
 0x288   :  { %1737 = vmatprep.subr.bf16.mxu0 %v2180_v0  ;;  %s1419_s20 = sshll.u32 %s2182_s10, 4  ;;  %s1420_s20 = int_to_ptr.vmem [resolvable:$true] %s1419_s20 }
 0x289   :  { %s2140_s19 = scalar_lea.vmem %s1420_s20, 256  ;;  %p2145_p7 = scmp.lt.s32.totalorder %s1420_s20, %s1420_s20 }
 0x28a   :  { %p2141_p6 = scmp.ne.s32.totalorder %s1420_s20, %s2140_s19  ;;  %p2146_p8 = scmp.lt.s32.totalorder %s2140_s19, %s2140_s19 }
 0x28b   :  { %1738 = vmatpush3.bf16.msra.mxu0 %v1907_v44 }
 0x28c   :  { %1739 = vmatprep.subr.bf16.mxu0 %v2180_v0  ;;  %p2147_p9 = por %p2146_p8, %p2145_p7 }
 0x28e   :  { %p2148_p10 = pnand %p2147_p9, %p2141_p6 }
 0x28f   :  { %1740 = vmatpush3.bf16.msra.mxu0 %v1908_v45 }
 0x290   :  { %1741 = vmatprep.subr.bf16.mxu0 %v2180_v0 }
 0x293   :  { %1742 = vmatpush3.bf16.msra.mxu0 %v1909_v47 }
 0x294   :  { %1743 = vmatprep.subr.bf16.mxu0 %v2180_v0 }
 0x297   :  { %1744 = vmatpush3.bf16.msra.mxu0 %v1910_v48 }
 0x298   :  { %1745 = vmatprep.subr.bf16.mxu0 %v2180_v0 }
 0x29b   :  { %1746 = vmatpush3.bf16.msra.mxu0 %v1911_v49 }
 0x29c   :  { %1771 = vmatprep.subr.bf16.mxu0 %v2180_v0 }
 0x351   :  { %v493_v12 = vpop.f32.mrb[4].mxu0 }
 0x352   :  { %v494_v13 = vadd.f32 %v2415_v11, %v493_v12  ;;  %v1709_v14 = vpop.f32.mrb[5].mxu0 }
 0x353   :  { %v496_v15 = vpop.f32.mrb[6].mxu0 }
 0x354   :  { %v1466_v16 = vmul.f32 -1.702, %v494_v13  ;;  %v497_v17 = vadd.f32 %v2415_v11, %v496_v15  ;;  %v1710_v19 = vpop.f32.mrb[7].mxu0 }
 0x355   :  { %v1913_v19 = vld [vmem:[#allocation7 + $0x8] sm:$0xff]  }
 0x356   :  { %v504_v20 = vmul.f32 1.442695, %v1466_v16  ;;  %v1467_v21 = vmul.f32 -1.702, %v497_v17 }
 0x358   :  { %1960 = vpow2.f32 %v504_v20  ;;  %v506_v22 = vmul.f32 1.442695, %v1467_v21  ;;  %v1914_v21 = vld [vmem:[#allocation7 + $0x10] sm:$0xff]  }
 0x35a   :  { %1962 = vpow2.f32 %v506_v22 }
 0x362   :  { %v1961_v23 = vpop.eup %1960 }
 0x363   :  { %v508_v24 = vadd.f32 1.0, %v1961_v23 }
 0x364   :  { %v1963_v25 = vpop.eup %1962 }
 0x365   :  { %1964 = vrcp.f32 %v508_v24  ;;  %v509_v26 = vadd.f32 1.0, %v1963_v25  ;;  %v1916_v24 = vld [vmem:[#allocation7 + $0x20] sm:$0xff]  }
 0x367   :  { %1966 = vrcp.f32 %v509_v26 }
 0x36f   :  { %v1965_v27 = vpop.eup %1964 }
 0x370   :  { %v514_v29 = vmul.f32 %v1965_v27, %v494_v13  ;;  %v1917_v27 = vld [vmem:[#allocation7 + $0x28] sm:$0xff]  }
 0x371   :  { %v1967_v28 = vpop.eup %1966 }
 0x372   :  { %v515_v30 = vmul.f32 %v1967_v28, %v497_v17  ;;  %v1918_v28 = vld [vmem:[#allocation7 + $0x30] sm:$0xff]  }
 0x374   :  { %v516_v32 = vpack.c.bf16 %v515_v30, %v514_v29  ;;  %v1919_v30 = vld [vmem:[#allocation7 + $0x38] sm:$0xff]  }
 0x376   :  { %1728 = vmatmul.mubr.bf16.vlgmr.msra.gmra.mrb[4].mxu1 %v516_v32 }
 0x377   :  { %1752 = vmatpush3.bf16.msra.mxu1 %v1895_v31  ;;  %1767 = vmatprep.mubr.msk.bf16.mxu1 %vm2181_vm0, %v2180_v0 }
 0x378   :  { %1753 = vmatprep.subr.bf16.mxu1 %v2180_v0 }
 0x37b   :  { %1754 = vmatpush3.bf16.msra.mxu1 %v1896_v33 }
 0x37c   :  { %1755 = vmatprep.subr.bf16.mxu1 %v2180_v0 }
 0x37f   :  { %1756 = vmatpush3.bf16.msra.mxu1 %v1897_v34 }
 0x380   :  { %1757 = vmatprep.subr.bf16.mxu1 %v2180_v0 }
 0x383   :  { %1758 = vmatpush3.bf16.msra.mxu1 %v1898_v35  ;;  %v1920_v35 = vld [vmem:[#allocation8] sm:$0xff]  }
 0x384   :  { %1759 = vmatprep.subr.bf16.mxu1 %v2180_v0 }
 0x387   :  { %1760 = vmatpush3.bf16.msra.mxu1 %v1899_v36  ;;  %v1921_v36 = vld [vmem:[#allocation8 + $0x8] sm:$0xff]  }
 0x388   :  { %1761 = vmatprep.subr.bf16.mxu1 %v2180_v0 }
 0x38b   :  { %1762 = vmatpush3.bf16.msra.mxu1 %v1900_v37  ;;  %v1922_v37 = vld [vmem:[#allocation8 + $0x10] sm:$0xff]  }
 0x38c   :  { %1763 = vmatprep.subr.bf16.mxu1 %v2180_v0 }
 0x38f   :  { %1764 = vmatpush3.bf16.msra.mxu1 %v1901_v38  ;;  %v1923_v38 = vld [vmem:[#allocation8 + $0x18] sm:$0xff]  }
 0x390   :  { %1765 = vmatprep.subr.bf16.mxu1 %v2180_v0 }
 0x393   :  { %1766 = vmatpush3.bf16.msra.mxu1 %v1902_v39  ;;  %v1924_v39 = vld [vmem:[#allocation8 + $0x20] sm:$0xff]  }
 0x394   :  { %1791 = vmatprep.subr.bf16.mxu1 %v2180_v0 }
 0x396   :  { %1768 = vmatmul.mubr.bf16.vlgmr.msra.gmra.mrb[8].mxu1 %v1903_v40  ;;  %v1925_v40 = vld [vmem:[#allocation8 + $0x28] sm:$0xff]  }
 0x397   :  { %1807 = vmatprep.mubr.msk.bf16.mxu1 %vm2181_vm0, %v2180_v0  ;;  %1792 = vmatpush3.bf16.msra.mxu1 %v1920_v35 }
 0x398   :  { %1793 = vmatprep.subr.bf16.mxu1 %v2180_v0 }
 0x39b   :  { %1794 = vmatpush3.bf16.msra.mxu1 %v1921_v36  ;;  %v1936_v36 = vld [vmem:[#allocation11] sm:$0xff]  }
 0x39c   :  { %1795 = vmatprep.subr.bf16.mxu1 %v2180_v0 }
 0x39f   :  { %1796 = vmatpush3.bf16.msra.mxu1 %v1922_v37  ;;  %v1938_v37 = vld [vmem:[#allocation11 + $0x10] sm:$0xff]  }
 0x3a0   :  { %1797 = vmatprep.subr.bf16.mxu1 %v2180_v0 }
 0x3a3   :  { %1798 = vmatpush3.bf16.msra.mxu1 %v1923_v38  ;;  %v1939_v38 = vld [vmem:[#allocation11 + $0x18] sm:$0xff]  }
 0x3a4   :  { %1799 = vmatprep.subr.bf16.mxu1 %v2180_v0 }
 0x3a7   :  { %1800 = vmatpush3.bf16.msra.mxu1 %v1924_v39  ;;  %v1940_v39 = vld [vmem:[#allocation11 + $0x20] sm:$0xff]  }
 0x3a8   :  { %1801 = vmatprep.subr.bf16.mxu1 %v2180_v0 }
 0x3ab   :  { %1802 = vmatpush3.bf16.msra.mxu1 %v1925_v40  ;;  %v1941_v40 = vld [vmem:[#allocation11 + $0x28] sm:$0xff]  }
 0x3ac   :  { %1803 = vmatprep.subr.bf16.mxu1 %v2180_v0 }
 0x3af   :  { %1804 = vmatpush3.bf16.msra.mxu1 %v1926_v41  ;;  %v1942_v41 = vld [vmem:[#allocation11 + $0x30] sm:$0xff]  }
 0x3b0   :  { %1805 = vmatprep.subr.bf16.mxu1 %v2180_v0 }
 0x3b3   :  { %1806 = vmatpush3.bf16.msra.mxu1 %v1927_v42  ;;  %v1943_v42 = vld [vmem:[#allocation11 + $0x38] sm:$0xff]  }
 0x3b4   :  { %1831 = vmatprep.subr.bf16.mxu1 %v2180_v0 }
 0x449   :  { %v622_v51 = vpop.f32.mrb[4].mxu1 }
 0x44a   :  { %v623_v52 = vadd.f32 %v2442_v50, %v622_v51  ;;  %v1729_v53 = vpop.f32.mrb[5].mxu1 }
 0x44b   :  { %v625_v54 = vpop.f32.mrb[6].mxu1 }
 0x44c   :  { %v1477_v55 = vmul.f32 -1.702, %v623_v52  ;;  %v626_v56 = vadd.f32 %v2442_v50, %v625_v54  ;;  %v1730_v57 = vpop.f32.mrb[7].mxu1 }
 0x44e   :  { %v633_v58 = vmul.f32 1.442695, %v1477_v55  ;;  %v1478_v59 = vmul.f32 -1.702, %v626_v56 }
 0x450   :  { %1968 = vpow2.f32 %v633_v58  ;;  %v635_v60 = vmul.f32 1.442695, %v1478_v59 }
 0x452   :  { %1970 = vpow2.f32 %v635_v60 }
 0x45a   :  { %v1969_v61 = vpop.eup %1968 }
 0x45b   :  { %v637_v62 = vadd.f32 1.0, %v1969_v61 }
 0x45c   :  { %v1971_v63 = vpop.eup %1970 }
 0x45d   :  { %1972 = vrcp.f32 %v637_v62  ;;  %v638_v1 = vadd.f32 1.0, %v1971_v63 }
 0x45f   :  { %1974 = vrcp.f32 %v638_v1 }
 0x467   :  { %v1973_v2 = vpop.eup %1972 }
 0x468   :  { %v643_v5 = vmul.f32 %v1973_v2, %v623_v52 }
 0x469   :  { %v1975_v3 = vpop.eup %1974  ;;  %v881_v4 = vpop.f32.mrb[8].mxu1 }
 0x46a   :  { %v644_v6 = vmul.f32 %v1975_v3, %v626_v56  ;;  %v882_v7 = vadd.f32 %v2381_v18, %v881_v4  ;;  %v1769_v8 = vpop.f32.mrb[9].mxu1 }
 0x46b   :  { %v884_v9 = vpop.f32.mrb[10].mxu1 }
 0x46c   :  { %v645_v12 = vpack.c.bf16 %v644_v6, %v643_v5  ;;  %v1500_v13 = vmul.f32 -1.702, %v882_v7  ;;  %v885_v14 = vadd.f32 %v2381_v18, %v884_v9  ;;  %v1770_v15 = vpop.f32.mrb[11].mxu1  ;;  %v1915_v18 = vld [vmem:[#allocation7 + $0x18] sm:$0xff]   ;;  %v1929_v9 = vld [vmem:[#allocation10 + $0x8] sm:$0xff]  }
 0x46d   :  { %v1934_v15 = vld [vmem:[#allocation10 + $0x30] sm:$0xff]  }
 0x46e   :  { %v892_v16 = vmul.f32 1.442695, %v1500_v13  ;;  %v1501_v17 = vmul.f32 -1.702, %v885_v14  ;;  %1748 = vmatmul.mubr.bf16.vlgmr.msra.gmra.mrb[8].mxu0 %v645_v12  ;;  %v1931_v12 = vld [vmem:[#allocation10 + $0x18] sm:$0xff]   ;;  %v1932_v13 = vld [vmem:[#allocation10 + $0x20] sm:$0xff]  }
 0x46f   :  { %1772 = vmatpush3.bf16.msra.mxu0 %v1912_v10  ;;  %1787 = vmatprep.mubr.msk.bf16.mxu0 %vm2181_vm0, %v2180_v0  ;;  %v1930_v10 = vld [vmem:[#allocation10 + $0x10] sm:$0xff]  }
 0x470   :  { %1976 = vpow2.f32 %v892_v16  ;;  %v894_v20 = vmul.f32 1.442695, %v1501_v17  ;;  %1773 = vmatprep.subr.bf16.mxu0 %v2180_v0  ;;  %v1935_v16 = vld [vmem:[#allocation10 + $0x38] sm:$0xff]  }
 0x472   :  { %1978 = vpow2.f32 %v894_v20 }
 0x473   :  { %1774 = vmatpush3.bf16.msra.mxu0 %v1913_v19 }
 0x474   :  { %1775 = vmatprep.subr.bf16.mxu0 %v2180_v0 }
 0x477   :  { %1776 = vmatpush3.bf16.msra.mxu0 %v1914_v21 }
 0x478   :  { %1777 = vmatprep.subr.bf16.mxu0 %v2180_v0 }
 0x47a   :  { %v1977_v22 = vpop.eup %1976 }
 0x47b   :  { %v896_v23 = vadd.f32 1.0, %v1977_v22  ;;  %1778 = vmatpush3.bf16.msra.mxu0 %v1915_v18 }
 0x47c   :  { %v1979_v25 = vpop.eup %1978  ;;  %1779 = vmatprep.subr.bf16.mxu0 %v2180_v0 }
 0x47d   :  { %1980 = vrcp.f32 %v896_v23  ;;  %v897_v26 = vadd.f32 1.0, %v1979_v25 }
 0x47f   :  { %1982 = vrcp.f32 %v897_v26  ;;  %1780 = vmatpush3.bf16.msra.mxu0 %v1916_v24 }
 0x480   :  { %1781 = vmatprep.subr.bf16.mxu0 %v2180_v0 }
 0x483   :  { %1782 = vmatpush3.bf16.msra.mxu0 %v1917_v27 }
 0x484   :  { %1783 = vmatprep.subr.bf16.mxu0 %v2180_v0 }
 0x487   :  { %v1981_v29 = vpop.eup %1980  ;;  %1784 = vmatpush3.bf16.msra.mxu0 %v1918_v28 }
 0x488   :  { %1785 = vmatprep.subr.bf16.mxu0 %v2180_v0  ;;  %v902_v32 = vmul.f32 %v1981_v29, %v882_v7 }
 0x489   :  { %v1983_v31 = vpop.eup %1982 }
 0x48a   :  { %v903_v33 = vmul.f32 %v1983_v31, %v885_v14  ;;  %v1933_v14 = vld [vmem:[#allocation10 + $0x28] sm:$0xff]  }
 0x48b   :  { %1786 = vmatpush3.bf16.msra.mxu0 %v1919_v30 }
 0x48c   :  { %v904_v34 = vpack.c.bf16 %v903_v33, %v902_v32  ;;  %1811 = vmatprep.subr.bf16.mxu0 %v2180_v0 }
 0x48e   :  { %1788 = vmatmul.mubr.bf16.vlgmr.msra.gmra.mrb[12].mxu0 %v904_v34 }
 0x48f   :  { %1827 = vmatprep.mubr.msk.bf16.mxu0 %vm2181_vm0, %v2180_v0 }
 0x541   :  { %v751_v44 = vpop.f32.mrb[8].mxu0 }
 0x542   :  { %v1749_v45 = vpop.f32.mrb[9].mxu0  ;;  %v752_v48 = vadd.f32 %v2471_v43, %v751_v44 }
 0x543   :  { %v754_v47 = vpop.f32.mrb[10].mxu0 }
 0x544   :  { %v755_v49 = vadd.f32 %v2471_v43, %v754_v47  ;;  %v1750_v51 = vpop.f32.mrb[11].mxu0 }
 0x546   :  { %v1553_v52 = vpack.c.bf16 %v755_v49, %v752_v48 }
 0x548   :  { %1554 = vst [vmem:[#allocation13] sm:$0xff] %v1553_v52  }
 0x561   :  { %v1010_v53 = vpop.f32.mrb[12].mxu0 }
 0x562   :  { %v1011_v54 = vadd.f32 %v2398_v46, %v1010_v53  ;;  %v1789_v55 = vpop.f32.mrb[13].mxu0 }
 0x563   :  { %v1013_v56 = vpop.f32.mrb[14].mxu0 }
 0x564   :  { %v1511_v57 = vmul.f32 -1.702, %v1011_v54  ;;  %v1014_v58 = vadd.f32 %v2398_v46, %v1013_v56  ;;  %v1790_v59 = vpop.f32.mrb[15].mxu0  ;;  %v1928_v46 = vld [vmem:[#allocation10] sm:$0xff]  }
 0x565   :  { %1812 = vmatpush3.bf16.msra.mxu0 %v1928_v46 }
 0x566   :  { %v1021_v60 = vmul.f32 1.442695, %v1511_v57  ;;  %v1512_v61 = vmul.f32 -1.702, %v1014_v58  ;;  %1813 = vmatprep.subr.bf16.mxu0 %v2180_v0 }
 0x568   :  { %1984 = vpow2.f32 %v1021_v60  ;;  %v1023_v62 = vmul.f32 1.442695, %v1512_v61 }
 0x569   :  { %1814 = vmatpush3.bf16.msra.mxu0 %v1929_v9 }
 0x56a   :  { %1986 = vpow2.f32 %v1023_v62  ;;  %1815 = vmatprep.subr.bf16.mxu0 %v2180_v0 }
 0x56d   :  { %1816 = vmatpush3.bf16.msra.mxu0 %v1930_v10 }
 0x56e   :  { %1817 = vmatprep.subr.bf16.mxu0 %v2180_v0 }
 0x571   :  { %1818 = vmatpush3.bf16.msra.mxu0 %v1931_v12 }
 0x572   :  { %v1985_v63 = vpop.eup %1984  ;;  %1819 = vmatprep.subr.bf16.mxu0 %v2180_v0 }
 0x573   :  { %v1025_v1 = vadd.f32 1.0, %v1985_v63 }
 0x574   :  { %v1987_v2 = vpop.eup %1986 }
 0x575   :  { %1988 = vrcp.f32 %v1025_v1  ;;  %v1026_v3 = vadd.f32 1.0, %v1987_v2  ;;  %1820 = vmatpush3.bf16.msra.mxu0 %v1932_v13 }
 0x576   :  { %1821 = vmatprep.subr.bf16.mxu0 %v2180_v0 }
 0x577   :  { %1990 = vrcp.f32 %v1026_v3 }
 0x579   :  { %1822 = vmatpush3.bf16.msra.mxu0 %v1933_v14 }
 0x57a   :  { %1823 = vmatprep.subr.bf16.mxu0 %v2180_v0 }
 0x57d   :  { %1824 = vmatpush3.bf16.msra.mxu0 %v1934_v15 }
 0x57e   :  { %1825 = vmatprep.subr.bf16.mxu0 %v2180_v0 }
 0x57f   :  { %v1989_v4 = vpop.eup %1988 }
 0x580   :  { %v1031_v6 = vmul.f32 %v1989_v4, %v1011_v54 }
 0x581   :  { %v1991_v5 = vpop.eup %1990  ;;  %1826 = vmatpush3.bf16.msra.mxu0 %v1935_v16 }
 0x582   :  { %v1032_v7 = vmul.f32 %v1991_v5, %v1014_v58 }
 0x584   :  { %v1033_v8 = vpack.c.bf16 %v1032_v7, %v1031_v6 }
 0x586   :  { %1808 = vmatmul.mubr.bf16.vlgmr.msra.gmra.mrb[12].mxu1 %v1033_v8 }
 0x587   :  { %1847 = vmatprep.mubr.msk.bf16.mxu1 %vm2181_vm0, %v2180_v0  ;;  %1832 = vmatpush3.bf16.msra.mxu1 %v1936_v36 }
 0x588   :  { %1833 = vmatprep.subr.bf16.mxu1 %v2180_v0 }
 0x659   :  { %v1139_v17 = vpop.f32.mrb[12].mxu1 }
 0x65a   :  { %v1140_v19 = vadd.f32 %v2415_v11, %v1139_v17  ;;  %v1809_v20 = vpop.f32.mrb[13].mxu1 }
 0x65b   :  { %v1142_v21 = vpop.f32.mrb[14].mxu1 }
 0x65c   :  { %v1522_v18 = vmul.f32 -1.702, %v1140_v19  ;;  %v1143_v22 = vadd.f32 %v2415_v11, %v1142_v21  ;;  %v1810_v23 = vpop.f32.mrb[15].mxu1  ;;  %v1937_v11 = vld [vmem:[#allocation11 + $0x8] sm:$0xff]  }
 0x65d   :  { %1834 = vmatpush3.bf16.msra.mxu1 %v1937_v11 }
 0x65e   :  { %v1150_v24 = vmul.f32 1.442695, %v1522_v18  ;;  %v1523_v25 = vmul.f32 -1.702, %v1143_v22  ;;  %1835 = vmatprep.subr.bf16.mxu1 %v2180_v0 }
 0x660   :  { %1992 = vpow2.f32 %v1150_v24  ;;  %v1152_v26 = vmul.f32 1.442695, %v1523_v25 }
 0x661   :  { %1836 = vmatpush3.bf16.msra.mxu1 %v1938_v37 }
 0x662   :  { %1994 = vpow2.f32 %v1152_v26  ;;  %1837 = vmatprep.subr.bf16.mxu1 %v2180_v0 }
 0x665   :  { %1838 = vmatpush3.bf16.msra.mxu1 %v1939_v38 }
 0x666   :  { %1839 = vmatprep.subr.bf16.mxu1 %v2180_v0 }
 0x669   :  { %1840 = vmatpush3.bf16.msra.mxu1 %v1940_v39 }
 0x66a   :  { %v1993_v27 = vpop.eup %1992  ;;  %1841 = vmatprep.subr.bf16.mxu1 %v2180_v0 }
 0x66b   :  { %v1154_v28 = vadd.f32 1.0, %v1993_v27 }
 0x66c   :  { %v1995_v29 = vpop.eup %1994 }
 0x66d   :  { %1996 = vrcp.f32 %v1154_v28  ;;  %v1155_v30 = vadd.f32 1.0, %v1995_v29  ;;  %1842 = vmatpush3.bf16.msra.mxu1 %v1941_v40 }
 0x66e   :  { %1843 = vmatprep.subr.bf16.mxu1 %v2180_v0 }
 0x66f   :  { %1998 = vrcp.f32 %v1155_v30 }
 0x671   :  { %1844 = vmatpush3.bf16.msra.mxu1 %v1942_v41 }
 0x672   :  { %1845 = vmatprep.subr.bf16.mxu1 %v2180_v0 }
 0x675   :  { %1846 = vmatpush3.bf16.msra.mxu1 %v1943_v42 }
 0x677   :  { %v1997_v31 = vpop.eup %1996 }
 0x678   :  { %v1160_v33 = vmul.f32 %v1997_v31, %v1140_v19 }
 0x679   :  { %v1999_v32 = vpop.eup %1998 }
 0x67a   :  { %v1161_v34 = vmul.f32 %v1999_v32, %v1143_v22 }
 0x67c   :  { %v1162_v35 = vpack.c.bf16 %v1161_v34, %v1160_v33 }
 0x67e   :  { %1828 = vmatmul.mubr.bf16.vlgmr.msra.gmra.mrb[16].mxu0 %v1162_v35 }
 0x751   :  { %v1268_v44 = vpop.f32.mrb[16].mxu0 }
 0x752   :  { %v1269_v45 = vadd.f32 %v2442_v50, %v1268_v44  ;;  %v1829_v47 = vpop.f32.mrb[17].mxu0 }
 0x753   :  { %v1271_v48 = vpop.f32.mrb[18].mxu0 }
 0x754   :  { %v1533_v49 = vmul.f32 -1.702, %v1269_v45  ;;  %v1272_v51 = vadd.f32 %v2442_v50, %v1271_v48  ;;  %v1830_v52 = vpop.f32.mrb[19].mxu0 }
 0x756   :  { %v1279_v53 = vmul.f32 1.442695, %v1533_v49  ;;  %v1534_v54 = vmul.f32 -1.702, %v1272_v51 }
 0x758   :  { %2000 = vpow2.f32 %v1279_v53  ;;  %v1281_v55 = vmul.f32 1.442695, %v1534_v54 }
 0x75a   :  { %2002 = vpow2.f32 %v1281_v55 }
 0x762   :  { %v2001_v56 = vpop.eup %2000 }
 0x763   :  { %v1283_v57 = vadd.f32 1.0, %v2001_v56 }
 0x764   :  { %v2003_v58 = vpop.eup %2002 }
 0x765   :  { %2004 = vrcp.f32 %v1283_v57  ;;  %v1284_v0 = vadd.f32 1.0, %v2003_v58 }
 0x767   :  { %2006 = vrcp.f32 %v1284_v0 }
 0x76f   :  { %v2005_v59 = vpop.eup %2004 }
 0x770   :  { %v1289_v61 = vmul.f32 %v2005_v59, %v1269_v45 }
 0x771   :  { %v2007_v60 = vpop.eup %2006 }
 0x772   :  { %v1290_v62 = vmul.f32 %v2007_v60, %v1272_v51 }
 0x774   :  { %v1291_v63 = vpack.c.bf16 %v1290_v62, %v1289_v61 }
 0x776   :  { %1848 = vmatmul.mubr.bf16.vlgmr.msra.gmra.mrb[16].mxu1 %v1291_v63 }
 0x849   :  { %v1397_v1 = vpop.f32.mrb[16].mxu1 }
 0x84a   :  { %v1849_v50 = vpop.f32.mrb[17].mxu1  ;;  %v1398_v3 = vadd.f32 %v2471_v43, %v1397_v1 }
 0x84b   :  { %v1400_v2 = vpop.f32.mrb[18].mxu1 }
 0x84c   :  { %v1401_v4 = vadd.f32 %v2471_v43, %v1400_v2  ;;  %v1850_v5 = vpop.f32.mrb[19].mxu1 }
 0x84e   :  { %v1558_v6 = vpack.c.bf16 %v1401_v4, %v1398_v3 }
 0x850   :  { %1560 = vst [vmem:[#allocation13 + $0x8] sm:$0xff] %v1558_v6  }
 0x851   :  { %2151 = shalt.err (!%p2148_p10)
}
 0x852   :  { %s2152_s3 = scalar_lea.hbm %s2525_s11, 256 }
 0x853   :  { %p2153_p11 = scmp.ne.s32.totalorder %s2525_s11, %s2152_s3  ;;  %p2156_p12 = scmp.lt.u32.totalorder %s2152_s3, %s2525_s11 }
 0x855   :  { %p2158_p13 = pnand %p2156_p12, %p2153_p11 }
 0x857   :  { %2161 = shalt.err (!%p2158_p13)
}
 0x858   :  { %1425 = dma.vmem_to_hbm [thread:$0]  %s1420_s20, 256, %s2525_s11, [#allocation4], %s2174_s29, %s2174_s29, %s2175_s30  }
 0x859   :  { %2170 = dma.done.wait [#allocation4], 256  }
 0x85a   :  { %2171 = vsyncadd [#allocation4], 4294967040 }
 0x85b   :  { %1429 = vsyncpa [#allocation3], 1 }
 0x85c   :  { %1430 = vsyncpa [#allocation6], 1 }
 0x85d   :  { %1431 = vsyncpa [#allocation9], 1 }
 0x85e   :  { %1432 = vsyncpa [#allocation12], 1 }
 0x85f   :  { %1433 = vsyncpa [#allocation4], 1 }

</bundles_post_ra>
